<compile_context>
chip_gen: v5e
topology: v5e:2x2
jax: 0.10.0
libtpu: 0.0.40
codegen_flags: <defaults>
</compile_context>

<pallas_src>
import functools

import jax
import jax.numpy as jnp
from jax import lax
from jax.experimental import pallas as pl
from jax.experimental.pallas import tpu as pltpu


def _round_up(x: int, m: int) -> int:
    return ((x + m - 1) // m) * m


def _fused_mlp_kernel(x_ref, *refs, n_layers, eps, slope, residual, compute_dtype):
    """Run one row-tile through every (Linear -> LayerNorm -> LeakyReLU) layer.

    x_ref : (tm, K0) input activation tile
    refs  : n_layers * (w_t (K_l, N_l), b (1, N_l), gamma (1, N_l), beta (1, N_l)),
            followed by o_ref (tm, N_last)
    """
    o_ref = refs[-1]
    param_refs = refs[:-1]

    x0 = x_ref[...].astype(jnp.float32)
    h = x0
    for l in range(n_layers):                      # unrolled: n_layers is static
        w_ref, b_ref, g_ref, beta_ref = param_refs[4 * l: 4 * l + 4]

        # Linear: (tm, K) @ (K, N) on the MXU, f32 accumulation.
        a = h.astype(compute_dtype)
        y = jnp.dot(a, w_ref[...], preferred_element_type=jnp.float32)
        y = y + b_ref[...].astype(jnp.float32)

        # LayerNorm over features (biased variance, torch default eps).
        mu = jnp.mean(y, axis=-1, keepdims=True)
        c = y - mu
        var = jnp.mean(c * c, axis=-1, keepdims=True)
        z = c * lax.rsqrt(var + eps)
        z = z * g_ref[...].astype(jnp.float32) + beta_ref[...].astype(jnp.float32)

        # LeakyReLU (cmp + select on the VPU).
        h = jnp.where(z >= 0.0, z, slope * z)

    if residual:
        h = h + x0

    o_ref[...] = h.astype(o_ref.dtype)


def mlp_forward(x, params, *, residual=False, slope=0.01, eps=1e-5,
                row_tile=512, compute_dtype=jnp.float32):
    """x: (..., input_dim); params: list of (w_t (K,N), b (N,), gamma (N,), beta (N,))."""
    orig_shape = x.shape
    h = x.reshape(-1, orig_shape[-1])
    M, K0 = h.shape
    n_layers = len(params)
    N_out = params[-1][0].shape[1]
    if residual:
        assert K0 == N_out, "residual requires input_dim == output_dim"

    # Row tile: large enough to feed the MXU and amortize per-step overhead
    # (~0.35 us/step), never larger than the 8-aligned problem, multiple of 8.
    tile = _round_up(min(row_tile, _round_up(M, 8)), 8)
    Mp = _round_up(M, tile)
    padded = Mp != M
    h_in = jnp.pad(h, ((0, Mp - M), (0, 0))) if padded else h

    p_itemsize = jnp.dtype(compute_dtype).itemsize
    flat_inputs = [h_in]
    in_specs = [pl.BlockSpec((tile, K0), lambda i: (i, 0))]
    flops = 0
    bytes_accessed = h_in.size * h_in.dtype.itemsize
    vmem_est = 2 * tile * (K0 + N_out) * 4            # double-buffered x / out tiles
    for (w_t, b, g, beta) in params:
        Kl, Nl = w_t.shape
        flat_inputs += [w_t.astype(compute_dtype),
                        b.reshape(1, Nl).astype(jnp.float32),
                        g.reshape(1, Nl).astype(jnp.float32),
                        beta.reshape(1, Nl).astype(jnp.float32)]
        in_specs += [
            pl.BlockSpec((Kl, Nl), lambda i: (0, 0)),   # resident weight (full block)
            pl.BlockSpec((1, Nl), lambda i: (0, 0)),    # bias
            pl.BlockSpec((1, Nl), lambda i: (0, 0)),    # ln gamma
            pl.BlockSpec((1, Nl), lambda i: (0, 0)),    # ln beta
        ]
        flops += 2 * Mp * Kl * Nl
        bytes_accessed += Kl * Nl * p_itemsize + 3 * Nl * 4
        vmem_est += 2 * (Kl * Nl * p_itemsize + 3 * Nl * 4) + tile * Nl * 4
    bytes_accessed += Mp * N_out * x.dtype.itemsize

    # Explicit scoped-VMEM budget with headroom, capped for v7x's 64 MiB VMEM.
    vmem_limit = int(min(max(32 * 1024 * 1024, 2 * vmem_est), 64 * 1024 * 1024))

    kernel = functools.partial(
        _fused_mlp_kernel, n_layers=n_layers, eps=eps, slope=slope,
        residual=residual, compute_dtype=compute_dtype)

    out = pl.pallas_call(
        kernel,
        out_shape=jax.ShapeDtypeStruct((Mp, N_out), x.dtype),
        grid_spec=pltpu.PrefetchScalarGridSpec(
            num_scalar_prefetch=0,
            grid=(Mp // tile,),
            in_specs=in_specs,
            out_specs=pl.BlockSpec((tile, N_out), lambda i: (i, 0)),
        ),
        compiler_params=pltpu.CompilerParams(
            dimension_semantics=("parallel",),
            vmem_limit_bytes=vmem_limit,
        ),
        cost_estimate=pl.CostEstimate(
            flops=flops,
            transcendentals=Mp * n_layers,
            bytes_accessed=bytes_accessed),
    )(*flat_inputs)

    if padded:
        out = out[:M]
    return out.reshape(orig_shape[:-1] + (N_out,))


def init_mlp_params(key, input_dim, hidden_dim=None, output_dim=None,
                    n_layers=1, dtype=jnp.float32):
    """Synthetic params matching the torch module; weights stored PRE-TRANSPOSED (K, N)."""
    if output_dim is None:
        output_dim = input_dim
    if hidden_dim is None:
        hidden_dim = output_dim
    dims = [[hidden_dim, hidden_dim] for _ in range(n_layers)]
    dims[0][0] = input_dim
    dims[-1][1] = output_dim

    params = []
    for (din, dout) in dims:
        key, kw, kb = jax.random.split(key, 3)
        bound = 1.0 / jnp.sqrt(din)
        w_t = jax.random.uniform(kw, (din, dout), dtype, -bound, bound)  # == torch W.T
        b = jax.random.uniform(kb, (dout,), dtype, -bound, bound)
        gamma = jnp.ones((dout,), dtype)
        beta = jnp.zeros((dout,), dtype)
        params.append((w_t, b, gamma, beta))
    return params


def _ref_forward(x, params, *, residual, slope=0.01, eps=1e-5):
    h = x.reshape(-1, x.shape[-1])
    y = h
    for (w_t, b, gamma, beta) in params:
        y = y @ w_t + b
        mu = jnp.mean(y, -1, keepdims=True)
        var = jnp.mean((y - mu) ** 2, -1, keepdims=True)
        y = (y - mu) / jnp.sqrt(var + eps) * gamma + beta
        y = jnp.where(y >= 0, y, slope * y)
    if residual:
        y = h + y
    return y.reshape(x.shape[:-1] + (y.shape[-1],))


if __name__ == "__main__":
    key = jax.random.PRNGKey(0)

    # Case 1: residual MLP, shapes consistent with the module (batch=2, seq=8, dim=32).
    batch, seq, dim = 2, 8, 32
    n_layers = 2
    k1, k2, k3, k4 = jax.random.split(key, 4)
    x = jax.random.normal(k1, (batch, seq, dim), jnp.float32)
    params = init_mlp_params(k2, input_dim=dim, hidden_dim=dim,
                             output_dim=dim, n_layers=n_layers)
    out = jax.block_until_ready(mlp_forward(x, params, residual=True, slope=0.01))
    ref = _ref_forward(x, params, residual=True)
    assert jnp.allclose(out, ref, atol=1e-4, rtol=1e-4), "mismatch vs reference (case 1)"

    # Case 2: non-square dims + row count not a multiple of the tile (exercises padding).
    x2 = jax.random.normal(k3, (3, 7, 32), jnp.float32)       # M = 21 rows
    params2 = init_mlp_params(k4, input_dim=32, hidden_dim=64,
                              output_dim=48, n_layers=3)
    out2 = jax.block_until_ready(mlp_forward(x2, params2, residual=False, slope=0.01))
    ref2 = _ref_forward(x2, params2, residual=False)
    assert out2.shape == (3, 7, 48)
    assert jnp.allclose(out2, ref2, atol=1e-4, rtol=1e-4), "mismatch vs reference (case 2)"

    print("KERNEL_OK")
</pallas_src>

<mosaic_0001>
module attributes {stable_mosaic.version = 11 : i64} {
  func.func @_fused_mlp_kernel(%arg0: i32, %arg1: memref<16x32xf32, #tpu.memory_space<vmem>>, %arg2: memref<32x32xf32, #tpu.memory_space<vmem>>, %arg3: memref<1x32xf32, #tpu.memory_space<vmem>>, %arg4: memref<1x32xf32, #tpu.memory_space<vmem>>, %arg5: memref<1x32xf32, #tpu.memory_space<vmem>>, %arg6: memref<32x32xf32, #tpu.memory_space<vmem>>, %arg7: memref<1x32xf32, #tpu.memory_space<vmem>>, %arg8: memref<1x32xf32, #tpu.memory_space<vmem>>, %arg9: memref<1x32xf32, #tpu.memory_space<vmem>>, %arg10: memref<16x32xf32, #tpu.memory_space<vmem>>) attributes {dimension_semantics = [#tpu.dimension_semantics<parallel>], iteration_bounds = array<i64: 1>, scalar_prefetch = 0 : i64, scratch_operands = 0 : i64, tpu.core_type = #tpu.core_type<tc>, window_params = [{transform_indices = @transform_0, window_bounds = array<i64: 16, 32>}, {pipeline_mode = #tpu.pipeline_mode<synchronous>, transform_indices = @transform_1, window_bounds = array<i64: 32, 32>}, {pipeline_mode = #tpu.pipeline_mode<synchronous>, transform_indices = @transform_2, window_bounds = array<i64: 1, 32>}, {pipeline_mode = #tpu.pipeline_mode<synchronous>, transform_indices = @transform_3, window_bounds = array<i64: 1, 32>}, {pipeline_mode = #tpu.pipeline_mode<synchronous>, transform_indices = @transform_4, window_bounds = array<i64: 1, 32>}, {pipeline_mode = #tpu.pipeline_mode<synchronous>, transform_indices = @transform_5, window_bounds = array<i64: 32, 32>}, {pipeline_mode = #tpu.pipeline_mode<synchronous>, transform_indices = @transform_6, window_bounds = array<i64: 1, 32>}, {pipeline_mode = #tpu.pipeline_mode<synchronous>, transform_indices = @transform_7, window_bounds = array<i64: 1, 32>}, {pipeline_mode = #tpu.pipeline_mode<synchronous>, transform_indices = @transform_8, window_bounds = array<i64: 1, 32>}, {transform_indices = @transform_9, window_bounds = array<i64: 16, 32>}]} {
    %c0 = arith.constant 0 : index
    %c0_0 = arith.constant 0 : index
    %0 = vector.load %arg1[%c0, %c0_0] : memref<16x32xf32, #tpu.memory_space<vmem>>, vector<16x32xf32>
    %c0_1 = arith.constant 0 : index
    %c0_2 = arith.constant 0 : index
    %1 = vector.load %arg2[%c0_1, %c0_2] : memref<32x32xf32, #tpu.memory_space<vmem>>, vector<32x32xf32>
    %cst = arith.constant dense<0.000000e+00> : vector<16x32xf32>
    %2 = tpu.matmul %0, %1, %cst {dimension_numbers = #tpu.dot_dimension_numbers<[1], [0], [0], [1], [0, 0, 1, 1], [], []>} : vector<16x32xf32>, vector<32x32xf32>, vector<16x32xf32> -> vector<16x32xf32>
    %c0_3 = arith.constant 0 : index
    %c0_4 = arith.constant 0 : index
    %3 = vector.load %arg3[%c0_3, %c0_4] : memref<1x32xf32, #tpu.memory_space<vmem>>, vector<1x32xf32>
    %4 = vector.broadcast %3 : vector<1x32xf32> to vector<16x32xf32>
    %5 = arith.addf %2, %4 : vector<16x32xf32>
    %cst_5 = arith.constant dense<0.000000e+00> : vector<16xf32>
    %6 = vector.multi_reduction <add>, %5, %cst_5 [1] : vector<16x32xf32> to vector<16xf32>
    %7 = vector.shape_cast %6 : vector<16xf32> to vector<16x1xf32>
    %cst_6 = arith.constant 3.200000e+01 : f32
    %8 = vector.broadcast %cst_6 : f32 to vector<16x1xf32>
    %9 = arith.divf %7, %8 : vector<16x1xf32>
    %10 = vector.broadcast %9 : vector<16x1xf32> to vector<16x32xf32>
    %11 = arith.subf %5, %10 : vector<16x32xf32>
    %12 = arith.mulf %11, %11 : vector<16x32xf32>
    %cst_7 = arith.constant dense<0.000000e+00> : vector<16xf32>
    %13 = vector.multi_reduction <add>, %12, %cst_7 [1] : vector<16x32xf32> to vector<16xf32>
    %14 = vector.shape_cast %13 : vector<16xf32> to vector<16x1xf32>
    %cst_8 = arith.constant 3.200000e+01 : f32
    %15 = vector.broadcast %cst_8 : f32 to vector<16x1xf32>
    %16 = arith.divf %14, %15 : vector<16x1xf32>
    %cst_9 = arith.constant 9.99999974E-6 : f32
    %17 = vector.broadcast %cst_9 : f32 to vector<16x1xf32>
    %18 = arith.addf %16, %17 : vector<16x1xf32>
    %19 = math.rsqrt %18 : vector<16x1xf32>
    %20 = vector.broadcast %19 : vector<16x1xf32> to vector<16x32xf32>
    %21 = arith.mulf %11, %20 : vector<16x32xf32>
    %c0_10 = arith.constant 0 : index
    %c0_11 = arith.constant 0 : index
    %22 = vector.load %arg4[%c0_10, %c0_11] : memref<1x32xf32, #tpu.memory_space<vmem>>, vector<1x32xf32>
    %23 = vector.broadcast %22 : vector<1x32xf32> to vector<16x32xf32>
    %24 = arith.mulf %21, %23 : vector<16x32xf32>
    %c0_12 = arith.constant 0 : index
    %c0_13 = arith.constant 0 : index
    %25 = vector.load %arg5[%c0_12, %c0_13] : memref<1x32xf32, #tpu.memory_space<vmem>>, vector<1x32xf32>
    %26 = vector.broadcast %25 : vector<1x32xf32> to vector<16x32xf32>
    %27 = arith.addf %24, %26 : vector<16x32xf32>
    %cst_14 = arith.constant 0.000000e+00 : f32
    %28 = vector.broadcast %cst_14 : f32 to vector<16x32xf32>
    %29 = arith.cmpf oge, %27, %28 : vector<16x32xf32>
    %cst_15 = arith.constant 0.00999999977 : f32
    %30 = vector.broadcast %cst_15 : f32 to vector<16x32xf32>
    %31 = arith.mulf %30, %27 : vector<16x32xf32>
    %32 = arith.select %29, %27, %31 : vector<16x32xi1>, vector<16x32xf32>
    %c0_16 = arith.constant 0 : index
    %c0_17 = arith.constant 0 : index
    %33 = vector.load %arg6[%c0_16, %c0_17] : memref<32x32xf32, #tpu.memory_space<vmem>>, vector<32x32xf32>
    %cst_18 = arith.constant dense<0.000000e+00> : vector<16x32xf32>
    %34 = tpu.matmul %32, %33, %cst_18 {dimension_numbers = #tpu.dot_dimension_numbers<[1], [0], [0], [1], [0, 0, 1, 1], [], []>} : vector<16x32xf32>, vector<32x32xf32>, vector<16x32xf32> -> vector<16x32xf32>
    %c0_19 = arith.constant 0 : index
    %c0_20 = arith.constant 0 : index
    %35 = vector.load %arg7[%c0_19, %c0_20] : memref<1x32xf32, #tpu.memory_space<vmem>>, vector<1x32xf32>
    %36 = vector.broadcast %35 : vector<1x32xf32> to vector<16x32xf32>
    %37 = arith.addf %34, %36 : vector<16x32xf32>
    %cst_21 = arith.constant dense<0.000000e+00> : vector<16xf32>
    %38 = vector.multi_reduction <add>, %37, %cst_21 [1] : vector<16x32xf32> to vector<16xf32>
    %39 = vector.shape_cast %38 : vector<16xf32> to vector<16x1xf32>
    %cst_22 = arith.constant 3.200000e+01 : f32
    %40 = vector.broadcast %cst_22 : f32 to vector<16x1xf32>
    %41 = arith.divf %39, %40 : vector<16x1xf32>
    %42 = vector.broadcast %41 : vector<16x1xf32> to vector<16x32xf32>
    %43 = arith.subf %37, %42 : vector<16x32xf32>
    %44 = arith.mulf %43, %43 : vector<16x32xf32>
    %cst_23 = arith.constant dense<0.000000e+00> : vector<16xf32>
    %45 = vector.multi_reduction <add>, %44, %cst_23 [1] : vector<16x32xf32> to vector<16xf32>
    %46 = vector.shape_cast %45 : vector<16xf32> to vector<16x1xf32>
    %cst_24 = arith.constant 3.200000e+01 : f32
    %47 = vector.broadcast %cst_24 : f32 to vector<16x1xf32>
    %48 = arith.divf %46, %47 : vector<16x1xf32>
    %cst_25 = arith.constant 9.99999974E-6 : f32
    %49 = vector.broadcast %cst_25 : f32 to vector<16x1xf32>
    %50 = arith.addf %48, %49 : vector<16x1xf32>
    %51 = math.rsqrt %50 : vector<16x1xf32>
    %52 = vector.broadcast %51 : vector<16x1xf32> to vector<16x32xf32>
    %53 = arith.mulf %43, %52 : vector<16x32xf32>
    %c0_26 = arith.constant 0 : index
    %c0_27 = arith.constant 0 : index
    %54 = vector.load %arg8[%c0_26, %c0_27] : memref<1x32xf32, #tpu.memory_space<vmem>>, vector<1x32xf32>
    %55 = vector.broadcast %54 : vector<1x32xf32> to vector<16x32xf32>
    %56 = arith.mulf %53, %55 : vector<16x32xf32>
    %c0_28 = arith.constant 0 : index
    %c0_29 = arith.constant 0 : index
    %57 = vector.load %arg9[%c0_28, %c0_29] : memref<1x32xf32, #tpu.memory_space<vmem>>, vector<1x32xf32>
    %58 = vector.broadcast %57 : vector<1x32xf32> to vector<16x32xf32>
    %59 = arith.addf %56, %58 : vector<16x32xf32>
    %cst_30 = arith.constant 0.000000e+00 : f32
    %60 = vector.broadcast %cst_30 : f32 to vector<16x32xf32>
    %61 = arith.cmpf oge, %59, %60 : vector<16x32xf32>
    %cst_31 = arith.constant 0.00999999977 : f32
    %62 = vector.broadcast %cst_31 : f32 to vector<16x32xf32>
    %63 = arith.mulf %62, %59 : vector<16x32xf32>
    %64 = arith.select %61, %59, %63 : vector<16x32xi1>, vector<16x32xf32>
    %65 = arith.addf %64, %0 : vector<16x32xf32>
    %c0_32 = arith.constant 0 : index
    %c0_33 = arith.constant 0 : index
    %66 = vector.load %arg10[%c0_32, %c0_33] : memref<16x32xf32, #tpu.memory_space<vmem>>, vector<16x32xf32>
    tpu.vector_store %arg10[%c0_32, %c0_33], %65 {strides = array<i32>} : memref<16x32xf32, #tpu.memory_space<vmem>>, vector<16x32xf32>,
    return
  }
  func.func @transform_0(%arg0: i32) -> (i32, i32) {
    %c0_i32 = arith.constant 0 : i32
    %c0_i32_0 = arith.constant 0 : i32
    return %arg0, %c0_i32 : i32, i32
  }
  func.func @transform_1(%arg0: i32) -> (i32, i32) {
    %c0_i32 = arith.constant 0 : i32
    %c0_i32_0 = arith.constant 0 : i32
    %c0_i32_1 = arith.constant 0 : i32
    return %c0_i32, %c0_i32_0 : i32, i32
  }
  func.func @transform_2(%arg0: i32) -> (i32, i32) {
    %c0_i32 = arith.constant 0 : i32
    %c0_i32_0 = arith.constant 0 : i32
    %c0_i32_1 = arith.constant 0 : i32
    return %c0_i32, %c0_i32_0 : i32, i32
  }
  func.func @transform_3(%arg0: i32) -> (i32, i32) {
    %c0_i32 = arith.constant 0 : i32
    %c0_i32_0 = arith.constant 0 : i32
    %c0_i32_1 = arith.constant 0 : i32
    return %c0_i32, %c0_i32_0 : i32, i32
  }
  func.func @transform_4(%arg0: i32) -> (i32, i32) {
    %c0_i32 = arith.constant 0 : i32
    %c0_i32_0 = arith.constant 0 : i32
    %c0_i32_1 = arith.constant 0 : i32
    return %c0_i32, %c0_i32_0 : i32, i32
  }
  func.func @transform_5(%arg0: i32) -> (i32, i32) {
    %c0_i32 = arith.constant 0 : i32
    %c0_i32_0 = arith.constant 0 : i32
    %c0_i32_1 = arith.constant 0 : i32
    return %c0_i32, %c0_i32_0 : i32, i32
  }
  func.func @transform_6(%arg0: i32) -> (i32, i32) {
    %c0_i32 = arith.constant 0 : i32
    %c0_i32_0 = arith.constant 0 : i32
    %c0_i32_1 = arith.constant 0 : i32
    return %c0_i32, %c0_i32_0 : i32, i32
  }
  func.func @transform_7(%arg0: i32) -> (i32, i32) {
    %c0_i32 = arith.constant 0 : i32
    %c0_i32_0 = arith.constant 0 : i32
    %c0_i32_1 = arith.constant 0 : i32
    return %c0_i32, %c0_i32_0 : i32, i32
  }
  func.func @transform_8(%arg0: i32) -> (i32, i32) {
    %c0_i32 = arith.constant 0 : i32
    %c0_i32_0 = arith.constant 0 : i32
    %c0_i32_1 = arith.constant 0 : i32
    return %c0_i32, %c0_i32_0 : i32, i32
  }
  func.func @transform_9(%arg0: i32) -> (i32, i32) {
    %c0_i32 = arith.constant 0 : i32
    %c0_i32_0 = arith.constant 0 : i32
    return %arg0, %c0_i32 : i32, i32
  }
}

</mosaic_0001>

<bundles_post_ra>
// kernel: tpu_custom_call.1
= control target key start
LH: loop header
LB: loop body
LE: loop exit
PB: predicated region body
PF: predicated region fallthrough
CT: control target
= control target key end

     0   :  { %14 = vsyncpa [#allocation3], 0  ;;  %s580_s0 = inlined_call_operand.hbm [shape: f32[16,32], index: 0, kind: input, shape index: {}]   ;;  %s581_s1 = inlined_call_operand.hbm [shape: f32[32,32], index: 1, kind: input, shape index: {}]   ;;  %s582_s2 = inlined_call_operand.vmem [shape: f32[1,32], index: 2, kind: input, shape index: {}]   ;;  %s583_s3 = inlined_call_operand.vmem [shape: f32[1,32], index: 3, kind: input, shape index: {}]   ;;  %s584_s4 = inlined_call_operand.vmem [shape: f32[1,32], index: 4, kind: input, shape index: {}]   ;;  %s585_s5 = inlined_call_operand.hbm [shape: f32[32,32], index: 5, kind: input, shape index: {}]   ;;  %s586_s6 = inlined_call_operand.vmem [shape: f32[1,32], index: 6, kind: input, shape index: {}]   ;;  %s587_s7 = inlined_call_operand.vmem [shape: f32[1,32], index: 7, kind: input, shape index: {}]   ;;  %s588_s8 = inlined_call_operand.vmem [shape: f32[1,32], index: 8, kind: input, shape index: {}]   ;;  %s589_s9 = inlined_call_operand.hbm [shape: f32[16,32], index: 9, kind: output, shape index: {}]  }
   0x1   :  { %15 = vsyncpa [#allocation6], 0 }
   0x2   :  { %16 = vsyncpa [#allocation4], 0  ;;  %s34_s11 = sshll.u32 %s581_s1, 4  ;;  %s449_s12 = smov [#allocation5]   ;;  %s35_s11 = int_to_ptr.hbm [resolvable:$true] %s34_s11 }
   0x3   :  { %s36_s13 = sshll.u32 %s449_s12, 4  ;;  %s21_s16 = sshll.u32 %s580_s0, 4  ;;  %s37_s13 = int_to_ptr.vmem [resolvable:$true] %s36_s13  ;;  %s22_s16 = int_to_ptr.hbm [resolvable:$true] %s21_s16 }
   0x4   :  { %s450_s17 = smov 128   ;;  %s451_s18 = smov 8  }
   0x5   :  { %42 = dma.hbm_to_vmem [thread:$0]  %s35_s11, 512, %s37_s13, [#allocation6], %s450_s17, %s450_s17, %s451_s18  }
   0x6   :  { %s452_s19 = smov [#allocation2]   ;;  %s53_s1 = sshll.u32 %s585_s5, 4  ;;  %s54_s1 = int_to_ptr.hbm [resolvable:$true] %s53_s1 }
   0x7   :  { %s23_s20 = sshll.u32 %s452_s19, 4  ;;  %s453_s0 = smov [#allocation7]   ;;  %s24_s20 = int_to_ptr.vmem [resolvable:$true] %s23_s20 }
   0x8   :  { %29 = dma.hbm_to_vmem [thread:$0]  %s22_s16, 256, %s24_s20, [#allocation3], %s450_s17, %s450_s17, %s451_s18  }
   0x9   :  { %s55_s23 = sshll.u32 %s453_s0, 4  ;;  %s56_s23 = int_to_ptr.vmem [resolvable:$true] %s55_s23 }
   0xa   :  { %61 = dma.hbm_to_vmem [thread:$0]  %s54_s1, 512, %s56_s23, [#allocation6], %s450_s17, %s450_s17, %s451_s18  }
   0xb   :  { %443 = dma.done.wait [#allocation3], 256  }
   0xc   :  { %444 = vsyncadd [#allocation3], 4294967040 }
   0xd   :  { %445 = dma.done.wait [#allocation6], 1024  }
   0xe   :  { %446 = vsyncadd [#allocation6], 4294966272  ;;  %v85_v0 = vld [vmem:[#allocation5 + $0x18] sm:$0xff]  ;;  %v84_v1 = vld [vmem:[#allocation5 + $0x10] sm:$0xff]  ;;  %vm90_vm0 = vcmask 261120   ;;  %v454_v13 = vmov 32.0  }
   0xf   :  { %316 = vmatpush.msra.mxu2 %v85_v0  ;;  %109 = vmatpush.msra.mxu0 %v85_v0  ;;  %v83_v2 = vld [vmem:[#allocation5 + $0x8] sm:$0xff]  ;;  %v82_v3 = vld [vmem:[#allocation5] sm:$0xff]  ;;  %v524_v4 = vld [vmem:[#allocation2 + $0x8] sm:$0xff]  ;;  %337 = vrcp.f32 %v454_v13  ;;  %s298_s12 = sshll.u32 %s589_s9, 4  ;;  %s299_s12 = int_to_ptr.hbm [resolvable:$true] %s298_s12 }
  0x10   :  { %v526_v5 = vld [vmem:[#allocation2] sm:$0xff]  ;;  %v192_v30 = vld [vmem:[#allocation7 + $0x18] sm:$0xff]  ;;  %v190_v32 = vld [vmem:[#allocation7 + $0x8] sm:$0xff] }
  0x11   :  { %317 = vmatpush.msra.mxu2 %v84_v1  ;;  %110 = vmatpush.msra.mxu0 %v84_v1  ;;  %v331_v6 = vld [vmem:[%s582_s2] ss:$0 sm:$0xff]  ;;  %v189_v33 = vld [vmem:[#allocation7] sm:$0xff] }
  0x12   :  { %320 = vmatpush.msra.mxu3 %v192_v30  ;;  %215 = vmatpush.msra.mxu1 %v192_v30  ;;  %v191_v31 = vld [vmem:[#allocation7 + $0x10] sm:$0xff] }
  0x13   :  { %318 = vmatpush.msra.mxu2 %v83_v2  ;;  %111 = vmatpush.msra.mxu0 %v83_v2  ;;  %v332_v48 = vld [vmem:[%s583_s3] ss:$0 sm:$0xff] }
  0x14   :  { %321 = vmatpush.msra.mxu3 %v191_v31  ;;  %216 = vmatpush.msra.mxu1 %v191_v31  ;;  %v333_v52 = vld [vmem:[%s584_s4] ss:$0 sm:$0xff] }
  0x15   :  { %319 = vmatpush.msra.mxu2 %v82_v3  ;;  %112 = vmatpush.msra.mxu0 %v82_v3  ;;  %v338_v14 = vpop.eup %337  ;;  %v334_v2 = vld [vmem:[%s586_s6] ss:$0 sm:$0xff] }
  0x16   :  { %313 = vmatmul.msk.f32.vlgmr.msra.gmra.mxu2 %vm90_vm0, %v524_v4  ;;  %312 = vmatmul.msk.f32.vlgmr.msra.gmra.mxu0 %vm90_vm0, %v526_v5  ;;  %v127_v15 = vmul.f32 32.0, %v338_v14  ;;  %vm131_vm1 = vweird.f32 %v338_v14 }
  0x17   :  { %322 = vmatpush.msra.mxu3 %v190_v32  ;;  %217 = vmatpush.msra.mxu1 %v190_v32 }
  0x18   :  { %v128_v16 = vsub.f32 1.0, %v127_v15 }
  0x19   :  { %323 = vmatpush.msra.mxu3 %v189_v33  ;;  %218 = vmatpush.msra.mxu1 %v189_v33 }
  0x1a   :  { %v129_v17 = vmul.f32 %v338_v14, %v128_v16 }
  0x1c   :  { %v130_v18 = vadd.f32 %v338_v14, %v129_v17 }
  0x1e   :  { %v537_v19 = vsel %vm131_vm1, %v338_v14, %v130_v18 }
  0x93   :  { %v114_v9 = vpop.f32.mrf.mxu0 }
  0x94   :  { %v115_v11 = vadd.f32 %v331_v6, %v114_v9 }
  0x96   :  { %v120_v12 = vsel %vm90_vm0, %v115_v11, 0.0 }
  0x99   :  { %v117_v7 = vpop.f32.mrf.mxu2 }
  0x9a   :  { %v118_v8 = vadd.f32 %v331_v6, %v117_v7 }
  0x9c   :  { %v123_v10 = vsel %vm90_vm0, %v118_v8, 0.0 }
  0x9d   :  { %124 = vadd.xlane.f32.xlu0 %v123_v10 }
  0xa5   :  { %121 = vadd.xlane.f32.xlu0 %v120_v12 }
 0x110   :  { %v125_v20 = vpop.xlane.xlu0 %124 }
 0x111   :  { %v134_v21 = vmul.f32 %v537_v19, %v125_v20 }
 0x113   :  { %v136_v22 = vsub.f32 %v118_v8, %v134_v21 }
 0x115   :  { %v138_v23 = vmul.f32 %v136_v22, %v136_v22 }
 0x117   :  { %v142_v24 = vsel %vm90_vm0, %v138_v23, 0.0 }
 0x118   :  { %143 = vadd.xlane.f32.xlu1 %v142_v24  ;;  %v122_v25 = vpop.xlane.xlu0 %121 }
 0x119   :  { %v133_v26 = vmul.f32 %v537_v19, %v122_v25 }
 0x11b   :  { %v135_v27 = vsub.f32 %v115_v11, %v133_v26 }
 0x11d   :  { %v137_v28 = vmul.f32 %v135_v27, %v135_v27 }
 0x11f   :  { %v139_v29 = vsel %vm90_vm0, %v137_v28, 0.0 }
 0x120   :  { %140 = vadd.xlane.f32.xlu1 %v139_v29 }
 0x18b   :  { %v144_v34 = vpop.xlane.xlu1 %143 }
 0x18c   :  { %v146_v35 = vmul.f32 %v144_v34, %v537_v19 }
 0x18e   :  { %v148_v36 = vadd.f32 1e-05, %v146_v35 }
 0x190   :  { %339 = vrsqrt.f32 %v148_v36  ;;  %vm165_vm3 = vweird.f32 %v148_v36 }
 0x193   :  { %v141_v37 = vpop.xlane.xlu1 %140 }
 0x194   :  { %v145_v38 = vmul.f32 %v141_v37, %v537_v19 }
 0x196   :  { %v340_v39 = vpop.eup %339  ;;  %v147_v40 = vadd.f32 1e-05, %v145_v38 }
 0x197   :  { %v160_v41 = vmul.f32 %v340_v39, %v148_v36  ;;  %vm166_vm2 = vweird.f32 %v340_v39  ;;  %v335_v36 = vld [vmem:[%s587_s7] ss:$0 sm:$0xff]  ;;  %s455_s7 = smov [#allocation8]  }
 0x198   :  { %341 = vrsqrt.f32 %v147_v40  ;;  %vm167_vm4 = vmor %vm165_vm3, %vm166_vm2  ;;  %vm155_vm6 = vweird.f32 %v147_v40 }
 0x199   :  { %v161_v42 = vmul.f32 %v340_v39, %v160_v41 }
 0x19b   :  { %v162_v43 = vmul.f32 0.5, %v161_v42 }
 0x19d   :  { %v163_v44 = vsub.f32 1.5, %v162_v43 }
 0x19e   :  { %v342_v45 = vpop.eup %341 }
 0x19f   :  { %v164_v46 = vmul.f32 %v340_v39, %v163_v44  ;;  %v150_v47 = vmul.f32 %v342_v45, %v147_v40  ;;  %vm156_vm5 = vweird.f32 %v342_v45 }
 0x1a0   :  { %vm157_vm7 = vmor %vm155_vm6, %vm156_vm5 }
 0x1a1   :  { %v168_v49 = vsel %vm167_vm4, %v340_v39, %v164_v46  ;;  %v151_v50 = vmul.f32 %v342_v45, %v150_v47 }
 0x1a2   :  { %v170_v51 = vmul.f32 %v168_v49, %v136_v22 }
 0x1a3   :  { %v152_v53 = vmul.f32 0.5, %v151_v50 }
 0x1a4   :  { %v176_v54 = vmul.f32 %v332_v48, %v170_v51 }
 0x1a5   :  { %v153_v55 = vsub.f32 1.5, %v152_v53 }
 0x1a6   :  { %v182_v56 = vadd.f32 %v333_v52, %v176_v54 }
 0x1a7   :  { %v154_v57 = vmul.f32 %v342_v45, %v153_v55 }
 0x1a8   :  { %vm184_vm8 = vcmp.ge.f32.partialorder %v182_v56, 0.0  ;;  %v186_v58 = vmul.f32 0.01, %v182_v56 }
 0x1a9   :  { %v158_v59 = vsel %vm157_vm7, %v342_v45, %v154_v57 }
 0x1aa   :  { %v169_v60 = vmul.f32 %v158_v59, %v135_v27  ;;  %v188_v61 = vsel %vm184_vm8, %v182_v56, %v186_v58 }
 0x1ab   :  { %315 = vmatmul.msk.f32.vlgmr.msra.gmra.mxu3 %vm90_vm0, %v188_v61 }
 0x1ac   :  { %v175_v62 = vmul.f32 %v332_v48, %v169_v60 }
 0x1ae   :  { %v181_v63 = vadd.f32 %v333_v52, %v175_v62 }
 0x1b0   :  { %vm183_vm9 = vcmp.ge.f32.partialorder %v181_v63, 0.0  ;;  %v185_v0 = vmul.f32 0.01, %v181_v63 }
 0x1b2   :  { %v187_v1 = vsel %vm183_vm9, %v181_v63, %v185_v0 }
 0x1b3   :  { %314 = vmatmul.msk.f32.vlgmr.msra.gmra.mxu1 %vm90_vm0, %v187_v1 }
 0x22e   :  { %v223_v8 = vpop.f32.mrf.mxu3 }
 0x22f   :  { %v224_v9 = vadd.f32 %v334_v2, %v223_v8 }
 0x230   :  { %v220_v3 = vpop.f32.mrf.mxu1 }
 0x231   :  { %v221_v6 = vadd.f32 %v334_v2, %v220_v3  ;;  %v229_v10 = vsel %vm90_vm0, %v224_v9, 0.0 }
 0x233   :  { %v226_v7 = vsel %vm90_vm0, %v221_v6, 0.0 }
 0x234   :  { %227 = vadd.xlane.f32.xlu2 %v226_v7 }
 0x23c   :  { %230 = vadd.xlane.f32.xlu2 %v229_v10 }
 0x2a7   :  { %v228_v11 = vpop.xlane.xlu2 %227 }
 0x2a8   :  { %v232_v12 = vmul.f32 %v228_v11, %v537_v19 }
 0x2aa   :  { %v234_v13 = vsub.f32 %v221_v6, %v232_v12 }
 0x2ac   :  { %v236_v14 = vmul.f32 %v234_v13, %v234_v13 }
 0x2ae   :  { %v238_v15 = vsel %vm90_vm0, %v236_v14, 0.0 }
 0x2af   :  { %239 = vadd.xlane.f32.xlu0 %v238_v15  ;;  %v231_v16 = vpop.xlane.xlu2 %230 }
 0x2b0   :  { %v233_v17 = vmul.f32 %v231_v16, %v537_v19 }
 0x2b2   :  { %v235_v18 = vsub.f32 %v224_v9, %v233_v17 }
 0x2b4   :  { %v237_v20 = vmul.f32 %v235_v18, %v235_v18 }
 0x2b6   :  { %v241_v21 = vsel %vm90_vm0, %v237_v20, 0.0 }
 0x2b7   :  { %242 = vadd.xlane.f32.xlu1 %v241_v21 }
 0x322   :  { %v240_v22 = vpop.xlane.xlu0 %239 }
 0x323   :  { %v244_v23 = vmul.f32 %v240_v22, %v537_v19 }
 0x325   :  { %v246_v24 = vadd.f32 1e-05, %v244_v23 }
 0x327   :  { %343 = vrsqrt.f32 %v246_v24  ;;  %vm254_vm11 = vweird.f32 %v246_v24 }
 0x32a   :  { %v243_v25 = vpop.xlane.xlu1 %242 }
 0x32b   :  { %v245_v26 = vmul.f32 %v243_v25, %v537_v19  ;;  %v336_v19 = vld [vmem:[%s588_s8] ss:$0 sm:$0xff]  ;;  %s296_s8 = sshll.u32 %s455_s7, 4  ;;  %s297_s8 = int_to_ptr.vmem [resolvable:$true] %s296_s8 }
 0x32d   :  { %v344_v27 = vpop.eup %343  ;;  %v247_v28 = vadd.f32 1e-05, %v245_v26 }
 0x32e   :  { %v249_v29 = vmul.f32 %v344_v27, %v246_v24  ;;  %vm255_vm10 = vweird.f32 %v344_v27 }
 0x32f   :  { %345 = vrsqrt.f32 %v247_v28  ;;  %vm256_vm12 = vmor %vm254_vm11, %vm255_vm10  ;;  %vm264_vm14 = vweird.f32 %v247_v28 }
 0x330   :  { %v250_v30 = vmul.f32 %v344_v27, %v249_v29 }
 0x332   :  { %v251_v31 = vmul.f32 0.5, %v250_v30 }
 0x334   :  { %v252_v32 = vsub.f32 1.5, %v251_v31 }
 0x335   :  { %v346_v33 = vpop.eup %345 }
 0x336   :  { %v253_v34 = vmul.f32 %v344_v27, %v252_v32  ;;  %v259_v35 = vmul.f32 %v346_v33, %v247_v28  ;;  %vm265_vm13 = vweird.f32 %v346_v33 }
 0x337   :  { %vm266_vm15 = vmor %vm264_vm14, %vm265_vm13 }
 0x338   :  { %v257_v37 = vsel %vm256_vm12, %v344_v27, %v253_v34  ;;  %v260_v38 = vmul.f32 %v346_v33, %v259_v35 }
 0x339   :  { %v268_v39 = vmul.f32 %v257_v37, %v234_v13 }
 0x33a   :  { %v261_v40 = vmul.f32 0.5, %v260_v38 }
 0x33b   :  { %v274_v41 = vmul.f32 %v335_v36, %v268_v39 }
 0x33c   :  { %v262_v42 = vsub.f32 1.5, %v261_v40 }
 0x33d   :  { %v280_v43 = vadd.f32 %v336_v19, %v274_v41 }
 0x33e   :  { %v263_v44 = vmul.f32 %v346_v33, %v262_v42 }
 0x33f   :  { %vm282_vm1 = vcmp.ge.f32.partialorder %v280_v43, 0.0  ;;  %v284_v45 = vmul.f32 0.01, %v280_v43 }
 0x340   :  { %v267_v46 = vsel %vm266_vm15, %v346_v33, %v263_v44 }
 0x341   :  { %v269_v47 = vmul.f32 %v267_v46, %v235_v18  ;;  %v286_v48 = vsel %vm282_vm1, %v280_v43, %v284_v45 }
 0x342   :  { %v288_v49 = vadd.f32 %v286_v48, %v526_v5 }
 0x343   :  { %v275_v50 = vmul.f32 %v335_v36, %v269_v47 }
 0x344   :  { %290 = vst.msk [vmem:[#allocation8] sm:$0xff] %vm90_vm0, %v288_v49 }
 0x345   :  { %v281_v51 = vadd.f32 %v336_v19, %v275_v50 }
 0x347   :  { %vm283_vm2 = vcmp.ge.f32.partialorder %v281_v51, 0.0  ;;  %v285_v52 = vmul.f32 0.01, %v281_v51 }
 0x349   :  { %v287_v53 = vsel %vm283_vm2, %v281_v51, %v285_v52 }
 0x34a   :  { %v289_v54 = vadd.f32 %v287_v53, %v524_v4 }
 0x34c   :  { %291 = vst.msk [vmem:[#allocation8 + $0x8] sm:$0xff] %vm90_vm0, %v289_v54 }
 0x34d   :  { %304 = dma.vmem_to_hbm [thread:$0]  %s297_s8, 256, %s299_s12, [#allocation4], %s450_s17, %s450_s17, %s451_s18  }
 0x34e   :  { %447 = dma.done.wait [#allocation4], 256  }
 0x34f   :  { %448 = vsyncadd [#allocation4], 4294967040 }
 0x350   :  { %309 = vsyncpa [#allocation3], 1 }
 0x351   :  { %310 = vsyncpa [#allocation6], 1 }
 0x352   :  { %311 = vsyncpa [#allocation4], 1 }

</bundles_post_ra>
